<compile_context>
chip_gen: v7x
topology: tpu7x:2x2x1
jax: 0.10.0
libtpu: 0.0.40
codegen_flags: <defaults>
</compile_context>

<pallas_src>
import functools

import jax
import jax.numpy as jnp
from jax import lax
from jax.experimental import pallas as pl
from jax.experimental.pallas import tpu as pltpu

LANE = 128
RESIDENT_BYTES = 4 * 1024 * 1024   # keep reduction operand VMEM-resident below this


def _round_up(x, m):
    return ((x + m - 1) // m) * m


def _pad2(a, rows, cols):
    return jnp.pad(a, ((0, rows - a.shape[0]), (0, cols - a.shape[1])))


@functools.lru_cache(maxsize=None)
def _vmem_limit_bytes():
    # Size the VMEM budget from the hardware (v5e/v6e: 128 MiB, v7x: 64 MiB/TC).
    try:
        cap = int(pltpu.get_tpu_info().vmem_capacity_bytes)
    except Exception:
        cap = 64 * 1024 * 1024
    return int(min(cap // 2, 64 * 1024 * 1024))


def _compiler_params(grid_rank):
    sem = ("parallel",) + ("arbitrary",) * (grid_rank - 1)
    return pltpu.CompilerParams(dimension_semantics=sem,
                                vmem_limit_bytes=_vmem_limit_bytes())


def _reduction_operand_spec(arr, tile_rows):
    """Spec for the operand indexed by the reduction grid axis (axis 1).

    If it fits the residency budget, use a full block with a constant index_map
    (fetched from HBM once for the whole grid) and slice it inside the kernel;
    otherwise stream (tile_rows, cols) blocks along the reduction axis.
    """
    rows, cols = arr.shape
    if arr.size * arr.dtype.itemsize <= RESIDENT_BYTES:
        return pl.BlockSpec((rows, cols), lambda i, k: (0, 0)), True
    return pl.BlockSpec((tile_rows, cols), lambda i, k: (k, 0)), False


def _take_reduction_rows(ref, resident, tile_rows):
    if resident:
        start = pl.multiple_of(pl.program_id(1) * tile_rows, tile_rows)
        return ref[pl.ds(start, tile_rows), :]
    return ref[...]


# ---------------------------------------------------------------------------
# Kernel L: Y = X @ W + b   (only needed for the first layer; later layers get
# their Y from the finalize of the previous layer's edge->node kernel)
# grid = (node tiles [parallel],)
# ---------------------------------------------------------------------------
def _linear_kernel(x_ref, w_ref, b_ref, y_ref):
    y = jnp.dot(x_ref[...], w_ref[...], preferred_element_type=jnp.float32)
    y_ref[...] = (y + b_ref[...]).astype(y_ref.dtype)


def linear(x, w, b, *, tile_n):
    n_pad, f_in = x.shape
    f_out = w.shape[1]
    # TODO(synk): tile the f_in reduction axis as well if nfeat is very large.
    return pl.pallas_call(
        _linear_kernel,
        out_shape=jax.ShapeDtypeStruct((n_pad, f_out), jnp.bfloat16),
        grid=(n_pad // tile_n,),
        in_specs=[
            pl.BlockSpec((tile_n, f_in), lambda i: (i, 0)),
            pl.BlockSpec((f_in, f_out), lambda i: (0, 0)),
            pl.BlockSpec((1, f_out), lambda i: (0, 0)),
        ],
        out_specs=pl.BlockSpec((tile_n, f_out), lambda i: (i, 0)),
        compiler_params=_compiler_params(1),
    )(x, w, b)


# ---------------------------------------------------------------------------
# Kernel A: node -> hyperedge.   Xe = diag(1/deg_e) * (H^T Y)
# grid = (edge tiles [parallel], node reduction tiles [arbitrary])
# ---------------------------------------------------------------------------
def _to_edge_kernel(ht_ref, y_ref, inv_de_ref, xe_ref, acc_ref, *,
                    y_resident, tile_rows):
    k = pl.program_id(1)

    @pl.when(k == 0)
    def _():
        acc_ref[...] = jnp.zeros_like(acc_ref)

    y = _take_reduction_rows(y_ref, y_resident, tile_rows)
    acc_ref[...] += jnp.dot(ht_ref[...], y, preferred_element_type=jnp.float32)

    @pl.when(k == pl.num_programs(1) - 1)
    def _():
        xe_ref[...] = (acc_ref[...] * inv_de_ref[...]).astype(xe_ref.dtype)


def to_edge(ht, y, inv_de, *, tile_n, tile_m):
    m_pad, n_pad = ht.shape
    f_out = y.shape[1]
    y_spec, y_res = _reduction_operand_spec(y, tile_n)
    kernel = functools.partial(_to_edge_kernel, y_resident=y_res,
                               tile_rows=tile_n)
    return pl.pallas_call(
        kernel,
        out_shape=jax.ShapeDtypeStruct((m_pad, f_out), jnp.bfloat16),
        grid=(m_pad // tile_m, n_pad // tile_n),
        in_specs=[
            # NOTE: pipeline_mode=pl.Buffered(3) on this streamed tile can hide
            # DMA jitter further; left at the default double-buffering.
            pl.BlockSpec((tile_m, tile_n), lambda j, k: (j, k)),
            y_spec,
            pl.BlockSpec((tile_m, 1), lambda j, k: (j, 0)),
        ],
        out_specs=pl.BlockSpec((tile_m, f_out), lambda j, k: (j, 0)),
        scratch_shapes=[pltpu.VMEM((tile_m, f_out), jnp.float32)],
        compiler_params=_compiler_params(2),
    )(ht, y, inv_de)


# ---------------------------------------------------------------------------
# Kernel B (hidden layers): hyperedge -> node, fused with ReLU and the NEXT
# layer's linear.   Y_next = relu(diag(1/deg_v) H Xe) @ W_next + b_next
# grid = (node tiles [parallel], edge reduction tiles [arbitrary])
# ---------------------------------------------------------------------------
def _to_node_hidden_kernel(h_ref, xe_ref, inv_dv_ref, w_ref, b_ref, y_ref,
                           acc_ref, *, xe_resident, tile_rows):
    k = pl.program_id(1)

    @pl.when(k == 0)
    def _():
        acc_ref[...] = jnp.zeros_like(acc_ref)

    xe = _take_reduction_rows(xe_ref, xe_resident, tile_rows)
    acc_ref[...] += jnp.dot(h_ref[...], xe, preferred_element_type=jnp.float32)

    @pl.when(k == pl.num_programs(1) - 1)
    def _():
        xv = jnp.maximum(acc_ref[...] * inv_dv_ref[...], 0.0)      # ReLU
        y = jnp.dot(xv.astype(jnp.bfloat16), w_ref[...],
                    preferred_element_type=jnp.float32)
        y_ref[...] = (y + b_ref[...]).astype(y_ref.dtype)


def to_node_hidden(h, xe, inv_dv, w_next, b_next, *, tile_n, tile_m):
    n_pad, m_pad = h.shape
    f_mid = xe.shape[1]
    f_next = w_next.shape[1]
    xe_spec, xe_res = _reduction_operand_spec(xe, tile_m)
    kernel = functools.partial(_to_node_hidden_kernel, xe_resident=xe_res,
                               tile_rows=tile_m)
    return pl.pallas_call(
        kernel,
        out_shape=jax.ShapeDtypeStruct((n_pad, f_next), jnp.bfloat16),
        grid=(n_pad // tile_n, m_pad // tile_m),
        in_specs=[
            pl.BlockSpec((tile_n, tile_m), lambda i, k: (i, k)),
            xe_spec,
            pl.BlockSpec((tile_n, 1), lambda i, k: (i, 0)),
            pl.BlockSpec((f_mid, f_next), lambda i, k: (0, 0)),
            pl.BlockSpec((1, f_next), lambda i, k: (0, 0)),
        ],
        out_specs=pl.BlockSpec((tile_n, f_next), lambda i, k: (i, 0)),
        scratch_shapes=[pltpu.VMEM((tile_n, f_mid), jnp.float32)],
        compiler_params=_compiler_params(2),
    )(h, xe, inv_dv, w_next, b_next)


# ---------------------------------------------------------------------------
# Kernel B (output layer): hyperedge -> node, fused with masked log_softmax.
# ---------------------------------------------------------------------------
def _to_node_final_kernel(h_ref, xe_ref, inv_dv_ref, out_ref, acc_ref, *,
                          xe_resident, tile_rows, valid_cols):
    k = pl.program_id(1)

    @pl.when(k == 0)
    def _():
        acc_ref[...] = jnp.zeros_like(acc_ref)

    xe = _take_reduction_rows(xe_ref, xe_resident, tile_rows)
    acc_ref[...] += jnp.dot(h_ref[...], xe, preferred_element_type=jnp.float32)

    @pl.when(k == pl.num_programs(1) - 1)
    def _():
        xv = acc_ref[...] * inv_dv_ref[...]
        # log_softmax over the true class columns only (lane padding masked).
        col = lax.broadcasted_iota(jnp.int32, xv.shape, 1)
        valid = col < valid_cols
        z = jnp.where(valid, xv, jnp.float32(-1e30))
        m = jnp.max(z, axis=1, keepdims=True)
        e = jnp.where(valid, jnp.exp(z - m), 0.0)
        lse = jnp.log(jnp.sum(e, axis=1, keepdims=True))
        out_ref[...] = jnp.where(valid, z - m - lse, 0.0).astype(out_ref.dtype)


def to_node_final(h, xe, inv_dv, valid_cols, *, tile_n, tile_m):
    n_pad, m_pad = h.shape
    f_out = xe.shape[1]
    xe_spec, xe_res = _reduction_operand_spec(xe, tile_m)
    kernel = functools.partial(_to_node_final_kernel, xe_resident=xe_res,
                               tile_rows=tile_m, valid_cols=valid_cols)
    return pl.pallas_call(
        kernel,
        out_shape=jax.ShapeDtypeStruct((n_pad, f_out), jnp.float32),
        grid=(n_pad // tile_n, m_pad // tile_m),
        in_specs=[
            pl.BlockSpec((tile_n, tile_m), lambda i, k: (i, k)),
            xe_spec,
            pl.BlockSpec((tile_n, 1), lambda i, k: (i, 0)),
        ],
        out_specs=pl.BlockSpec((tile_n, f_out), lambda i, k: (i, 0)),
        scratch_shapes=[pltpu.VMEM((tile_n, f_out), jnp.float32)],
        compiler_params=_compiler_params(2),
    )(h, xe, inv_dv)


# ---------------------------------------------------------------------------
# Model: params + forward
# ---------------------------------------------------------------------------
def init_params(key, nfeat, nhid, nclass, nlayer, nhead):
    """Deterministic Glorot-style init matching the module's layer shapes."""
    dims = [(nfeat, nhid * nhead)] + [(nhid * nhead, nhid * nhead)
                                      for _ in range(nlayer - 2)]
    params = {"convs": [], "conv_out": None}
    for (din, dout) in dims:
        key, kw = jax.random.split(key)
        scale = (6.0 / (din + dout)) ** 0.5
        w = jax.random.uniform(kw, (din, dout), jnp.float32, -scale, scale)
        params["convs"].append((w, jnp.zeros((1, dout), jnp.float32)))
    din, dout = nhid * nhead, nclass
    key, kw = jax.random.split(key)
    scale = (6.0 / (din + dout)) ** 0.5
    w = jax.random.uniform(kw, (din, dout), jnp.float32, -scale, scale)
    params["conv_out"] = (w, jnp.zeros((1, dout), jnp.float32))
    return params


def dgl_hgnn_forward(X, V, E, params, num_nodes, num_edges, nclass,
                     tile_n=256, tile_m=256):
    """Forward pass of DGLHGNN (eval mode; dropout layers are identity)."""
    # --- glue: dense incidence, degrees, lane/row padding (built once) ---
    # TODO(synk): duplicate (node, edge) pairs in V/E are deduplicated here; a
    # DGL graph with repeated incidences counts them in the mean aggregation.
    # TODO(synk): for very large hypergraphs, replace the dense [N, M]
    # incidence with CSR-blocked gathers via PrefetchScalarGridSpec.
    H = jnp.zeros((num_nodes, num_edges), jnp.float32).at[V, E].set(1.0)
    deg_e = jnp.maximum(jnp.sum(H, axis=0), 1.0).reshape(num_edges, 1)
    deg_v = jnp.maximum(jnp.sum(H, axis=1), 1.0).reshape(num_nodes, 1)

    n_pad = _round_up(max(num_nodes, tile_n), tile_n)
    m_pad = _round_up(max(num_edges, tile_m), tile_m)

    h_pad = _pad2(H, n_pad, m_pad).astype(jnp.bfloat16)      # 0/1: exact bf16
    ht_pad = _pad2(H.T, m_pad, n_pad).astype(jnp.bfloat16)   # no in-kernel transpose
    inv_de = _pad2(1.0 / deg_e, m_pad, 1)
    inv_dv = _pad2(1.0 / deg_v, n_pad, 1)

    def pad_wb(w, b):
        fi = _round_up(max(w.shape[0], LANE), LANE)
        fo = _round_up(max(w.shape[1], LANE), LANE)
        return _pad2(w, fi, fo).astype(jnp.bfloat16), _pad2(b, 1, fo)

    layers = list(params["convs"]) + [params["conv_out"]]
    padded = [pad_wb(w, b) for (w, b) in layers]

    f_in_pad = padded[0][0].shape[0]
    x0 = _pad2(X, n_pad, f_in_pad).astype(jnp.bfloat16)

    # Layer 0 linear; later layers get their Y from the fused kernel B.
    y = linear(x0, padded[0][0], padded[0][1], tile_n=tile_n)

    n_hidden = len(params["convs"])
    for i in range(n_hidden):
        xe = to_edge(ht_pad, y, inv_de, tile_n=tile_n, tile_m=tile_m)
        w_next, b_next = padded[i + 1]
        y = to_node_hidden(h_pad, xe, inv_dv, w_next, b_next,
                           tile_n=tile_n, tile_m=tile_m)
    xe = to_edge(ht_pad, y, inv_de, tile_n=tile_n, tile_m=tile_m)
    out = to_node_final(h_pad, xe, inv_dv, nclass, tile_n=tile_n, tile_m=tile_m)
    return out[:num_nodes, :nclass]


def _reference_forward(X, V, E, params, num_nodes, num_edges):
    """Pure-JAX f32 reference of the same forward-pass semantics."""
    H = jnp.zeros((num_nodes, num_edges), jnp.float32).at[V, E].set(1.0)
    inv_de = 1.0 / jnp.maximum(jnp.sum(H, axis=0), 1.0).reshape(num_edges, 1)
    inv_dv = 1.0 / jnp.maximum(jnp.sum(H, axis=1), 1.0).reshape(num_nodes, 1)

    def conv(x, w, b):
        y = x @ w + b
        xe = inv_de * (H.T @ y)
        return inv_dv * (H @ xe)

    h = X
    for (w, b) in params["convs"]:
        h = jnp.maximum(conv(h, w, b), 0.0)
    w, b = params["conv_out"]
    return jax.nn.log_softmax(conv(h, w, b), axis=1)


if __name__ == "__main__":
    # Small, module-consistent shapes.
    N, M = 16, 8          # |V| nodes, |E| hyperedges
    NODES_PER_EDGE = 4    # nnz = 32
    nfeat, nhid, nhead, nclass, nlayer = 32, 8, 2, 4, 2

    key = jax.random.PRNGKey(0)
    k_x, k_v, k_p = jax.random.split(key, 3)

    X = jax.random.normal(k_x, (N, nfeat), jnp.float32)
    # Incidence index lists: V = node indices, E = hyperedge indices (nnz long).
    V = jax.random.randint(k_v, (M * NODES_PER_EDGE,), 0, N, dtype=jnp.int32)
    E = jnp.repeat(jnp.arange(M, dtype=jnp.int32), NODES_PER_EDGE)

    params = init_params(k_p, nfeat, nhid, nclass, nlayer, nhead)

    out = dgl_hgnn_forward(X, V, E, params, num_nodes=N, num_edges=M,
                           nclass=nclass)
    out = jax.block_until_ready(out)

    assert out.shape == (N, nclass)
    # log_softmax rows must sum (in prob space) to ~1.
    assert bool(jnp.allclose(jnp.sum(jnp.exp(out), axis=1), 1.0, atol=1e-4))
    # Pure-JAX f32 reference (kernel uses bf16 MXU inputs with f32 accumulation).
    ref = _reference_forward(X, V, E, params, num_nodes=N, num_edges=M)
    err = float(jnp.max(jnp.abs(out - ref)))
    assert err < 5e-2, err
    print("KERNEL_OK")
</pallas_src>

<mosaic_0001>
module attributes {stable_mosaic.version = 11 : i64} {
  func.func @_linear_kernel(%arg0: i32, %arg1: memref<256x128xbf16, #tpu.memory_space<vmem>>, %arg2: memref<128x128xbf16, #tpu.memory_space<vmem>>, %arg3: memref<1x128xf32, #tpu.memory_space<vmem>>, %arg4: memref<256x128xbf16, #tpu.memory_space<vmem>>) attributes {dimension_semantics = [#tpu.dimension_semantics<parallel>], iteration_bounds = array<i64: 1>, scalar_prefetch = 0 : i64, scratch_operands = 0 : i64, tpu.core_type = #tpu.core_type<tc>, window_params = [{transform_indices = @transform_0, window_bounds = array<i64: 256, 128>}, {pipeline_mode = #tpu.pipeline_mode<synchronous>, transform_indices = @transform_1, window_bounds = array<i64: 128, 128>}, {pipeline_mode = #tpu.pipeline_mode<synchronous>, transform_indices = @transform_2, window_bounds = array<i64: 1, 128>}, {transform_indices = @transform_3, window_bounds = array<i64: 256, 128>}]} {
    %c0 = arith.constant 0 : index
    %c0_0 = arith.constant 0 : index
    %0 = vector.load %arg1[%c0, %c0_0] : memref<256x128xbf16, #tpu.memory_space<vmem>>, vector<256x128xbf16>
    %c0_1 = arith.constant 0 : index
    %c0_2 = arith.constant 0 : index
    %1 = vector.load %arg2[%c0_1, %c0_2] : memref<128x128xbf16, #tpu.memory_space<vmem>>, vector<128x128xbf16>
    %cst = arith.constant dense<0.000000e+00> : vector<256x128xf32>
    %2 = tpu.matmul %0, %1, %cst {dimension_numbers = #tpu.dot_dimension_numbers<[1], [0], [0], [1], [0, 0, 1, 1], [], []>} : vector<256x128xbf16>, vector<128x128xbf16>, vector<256x128xf32> -> vector<256x128xf32>
    %c0_3 = arith.constant 0 : index
    %c0_4 = arith.constant 0 : index
    %3 = vector.load %arg3[%c0_3, %c0_4] : memref<1x128xf32, #tpu.memory_space<vmem>>, vector<1x128xf32>
    %4 = vector.broadcast %3 : vector<1x128xf32> to vector<256x128xf32>
    %5 = arith.addf %2, %4 : vector<256x128xf32>
    %6 = arith.truncf %5 : vector<256x128xf32> to vector<256x128xbf16>
    %c0_5 = arith.constant 0 : index
    %c0_6 = arith.constant 0 : index
    %7 = vector.load %arg4[%c0_5, %c0_6] : memref<256x128xbf16, #tpu.memory_space<vmem>>, vector<256x128xbf16>
    tpu.vector_store %arg4[%c0_5, %c0_6], %6 {strides = array<i32>} : memref<256x128xbf16, #tpu.memory_space<vmem>>, vector<256x128xbf16>,
    return
  }
  func.func @transform_0(%arg0: i32) -> (i32, i32) {
    %c0_i32 = arith.constant 0 : i32
    %c0_i32_0 = arith.constant 0 : i32
    return %arg0, %c0_i32 : i32, i32
  }
  func.func @transform_1(%arg0: i32) -> (i32, i32) {
    %c0_i32 = arith.constant 0 : i32
    %c0_i32_0 = arith.constant 0 : i32
    %c0_i32_1 = arith.constant 0 : i32
    return %c0_i32, %c0_i32_0 : i32, i32
  }
  func.func @transform_2(%arg0: i32) -> (i32, i32) {
    %c0_i32 = arith.constant 0 : i32
    %c0_i32_0 = arith.constant 0 : i32
    %c0_i32_1 = arith.constant 0 : i32
    return %c0_i32, %c0_i32_0 : i32, i32
  }
  func.func @transform_3(%arg0: i32) -> (i32, i32) {
    %c0_i32 = arith.constant 0 : i32
    %c0_i32_0 = arith.constant 0 : i32
    return %arg0, %c0_i32 : i32, i32
  }
}

</mosaic_0001>

<bundles_post_ra>
// kernel: tpu_custom_call.1
= control target key start
LH: loop header
LB: loop body
LE: loop exit
PB: predicated region body
PF: predicated region fallthrough
CT: control target
= control target key end

     0   :  { %8 = vsyncpa [#allocation3], 0  ;;  %s1062_s0 = inlined_call_operand.hbm [shape: bf16[256,128], index: 0, kind: input, shape index: {}]   ;;  %s1063_s1 = inlined_call_operand.hbm [shape: bf16[128,128], index: 1, kind: input, shape index: {}]   ;;  %s1064_s2 = inlined_call_operand.vmem [shape: f32[1,128], index: 2, kind: input, shape index: {}]   ;;  %s1065_s3 = inlined_call_operand.hbm [shape: bf16[256,128], index: 3, kind: output, shape index: {}]  }
   0x1   :  { %9 = vsyncpa [#allocation6], 0 }
   0x2   :  { %10 = vsyncpa [#allocation4], 0  ;;  %s955_s12 = smov [#allocation2]   ;;  %s883_s16 = scalar_lea.hbm %s1062_s0, 2048 }
   0x3   :  { %s16_s13 = sshll.u32 %s955_s12, 4  ;;  %p884_p0 = scmp.ne.s32.totalorder %s1062_s0, %s883_s16  ;;  %s17_s13 = int_to_ptr.vmem [resolvable:$true] %s16_s13 }
   0x4   :  { %p887_p1 = scmp.lt.u32.totalorder %s883_s16, %s1062_s0 }
   0x6   :  { %p889_p2 = pnand %p887_p1, %p884_p0 }
   0x8   :  { %892 = shalt.err (!%p889_p2)
}
   0x9   :  { %s893_s21 = scalar_lea.vmem %s17_s13, 2048  ;;  %p898_p4 = scmp.lt.s32.totalorder %s17_s13, %s17_s13 }
   0xa   :  { %p894_p3 = scmp.ne.s32.totalorder %s17_s13, %s893_s21  ;;  %p899_p5 = scmp.lt.s32.totalorder %s893_s21, %s893_s21 }
   0xc   :  { %p900_p6 = por %p899_p5, %p898_p4 }
   0xe   :  { %p901_p7 = pnand %p900_p6, %p894_p3 }
  0x10   :  { %904 = shalt.err (!%p901_p7)
}
  0x11   :  { %s956_s22 = smov 64   ;;  %s957_s23 = smov 4  }
  0x12   :  { %22 = dma.hbm_to_vmem [thread:$0]  %s1062_s0, 2048, %s17_s13, [#allocation3], %s956_s22, %s956_s22, %s957_s23  }
  0x13   :  { %s958_s26 = smov [#allocation5]   ;;  %s905_s30 = scalar_lea.hbm %s1063_s1, 1024 }
  0x14   :  { %s28_s27 = sshll.u32 %s958_s26, 4  ;;  %p906_p8 = scmp.ne.s32.totalorder %s1063_s1, %s905_s30  ;;  %s29_s27 = int_to_ptr.vmem [resolvable:$true] %s28_s27 }
  0x15   :  { %p909_p9 = scmp.lt.u32.totalorder %s905_s30, %s1063_s1 }
  0x17   :  { %p911_p10 = pnand %p909_p9, %p906_p8 }
  0x19   :  { %914 = shalt.err (!%p911_p10)
}
  0x1a   :  { %s915_s8 = scalar_lea.vmem %s29_s27, 1024  ;;  %p920_p12 = scmp.lt.s32.totalorder %s29_s27, %s29_s27 }
  0x1b   :  { %p916_p11 = scmp.ne.s32.totalorder %s29_s27, %s915_s8  ;;  %p921_p13 = scmp.lt.s32.totalorder %s915_s8, %s915_s8 }
  0x1d   :  { %p922_p0 = por %p921_p13, %p920_p12 }
  0x1f   :  { %p923_p1 = pnand %p922_p0, %p916_p11 }
  0x21   :  { %926 = shalt.err (!%p923_p1)
}
  0x22   :  { %34 = dma.hbm_to_vmem [thread:$0]  %s1063_s1, 1024, %s29_s27, [#allocation6], %s956_s22, %s956_s22, %s957_s23  }
  0x23   :  { %949 = dma.done.wait [#allocation3], 2048  }
  0x24   :  { %950 = vsyncadd [#allocation3], 4294965248 }
  0x25   :  { %951 = dma.done.wait [#allocation6], 1024  }
  0x26   :  { %952 = vsyncadd [#allocation6], 4294966272  ;;  %v859_v0 = vld [vmem:[#allocation5] sm:$0xff]   ;;  %v860_v1 = vld [vmem:[#allocation5 + $0x8] sm:$0xff]  }
  0x27   :  { %790 = vmatprep.subr.bf16.mxu0 %v859_v0  ;;  %838 = vmatprep.subr.bf16.mxu1 %v859_v0  ;;  %v861_v2 = vld [vmem:[#allocation5 + $0x10] sm:$0xff]   ;;  %v862_v3 = vld [vmem:[#allocation5 + $0x18] sm:$0xff]   ;;  %v867_v4 = vld [vmem:[#allocation2] sm:$0xff]  }
  0x28   :  { %791 = vmatpush3.bf16.msra.mxu0 %v859_v0  ;;  %846 = vmatpush3.bf16.msra.mxu1 %v859_v0  ;;  %v868_v5 = vld [vmem:[#allocation2 + $0x40] sm:$0xff]   ;;  %v864_v7 = vld [vmem:[#allocation5 + $0x28] sm:$0xff]   ;;  %v865_v8 = vld [vmem:[#allocation5 + $0x30] sm:$0xff]  }
  0x29   :  { %792 = vmatprep.subr.bf16.mxu0 %v860_v1  ;;  %839 = vmatprep.subr.bf16.mxu1 %v860_v1  ;;  %v863_v6 = vld [vmem:[#allocation5 + $0x20] sm:$0xff]   ;;  %v866_v9 = vld [vmem:[#allocation5 + $0x38] sm:$0xff]   ;;  %v869_v10 = vld [vmem:[#allocation2 + $0x8] sm:$0xff]  }
  0x2a   :  { %806 = vmatprep.mubr.bf16.mxu0 %v867_v4  ;;  %822 = vmatprep.mubr.bf16.mxu1 %v868_v5  ;;  %v870_v11 = vld [vmem:[#allocation2 + $0x48] sm:$0xff]   ;;  %v871_v12 = vld [vmem:[#allocation2 + $0x10] sm:$0xff]   ;;  %v873_v14 = vld [vmem:[#allocation2 + $0x18] sm:$0xff]  }
  0x2b   :  { %v872_v13 = vld [vmem:[#allocation2 + $0x50] sm:$0xff]   ;;  %v874_v15 = vld [vmem:[#allocation2 + $0x58] sm:$0xff]   ;;  %v875_v16 = vld [vmem:[#allocation2 + $0x20] sm:$0xff]  }
  0x2c   :  { %793 = vmatpush3.bf16.msra.mxu0 %v860_v1  ;;  %847 = vmatpush3.bf16.msra.mxu1 %v860_v1  ;;  %v876_v17 = vld [vmem:[#allocation2 + $0x60] sm:$0xff]   ;;  %v877_v18 = vld [vmem:[#allocation2 + $0x28] sm:$0xff]   ;;  %v879_v20 = vld [vmem:[#allocation2 + $0x30] sm:$0xff]  }
  0x2d   :  { %794 = vmatprep.subr.bf16.mxu0 %v861_v2  ;;  %840 = vmatprep.subr.bf16.mxu1 %v861_v2  ;;  %v878_v19 = vld [vmem:[#allocation2 + $0x68] sm:$0xff]   ;;  %v880_v21 = vld [vmem:[#allocation2 + $0x70] sm:$0xff]   ;;  %v881_v22 = vld [vmem:[#allocation2 + $0x38] sm:$0xff]  }
  0x2e   :  { %v882_v23 = vld [vmem:[#allocation2 + $0x78] sm:$0xff]   ;;  %v1013_v25 = vld [vmem:[%s1064_s2] ss:$0 sm:$0xff]  ;;  %s959_s2 = smov [#allocation7]  }
  0x2f   :  { %s569_s11 = sshll.u32 %s959_s2, 4  ;;  %s570_s11 = int_to_ptr.vmem [resolvable:$true] %s569_s11 }
  0x30   :  { %795 = vmatpush3.bf16.msra.mxu0 %v861_v2  ;;  %848 = vmatpush3.bf16.msra.mxu1 %v861_v2  ;;  %s927_s12 = scalar_lea.vmem %s570_s11, 2048  ;;  %p932_p3 = scmp.lt.s32.totalorder %s570_s11, %s570_s11 }
  0x31   :  { %796 = vmatprep.subr.bf16.mxu0 %v862_v3  ;;  %841 = vmatprep.subr.bf16.mxu1 %v862_v3  ;;  %p928_p2 = scmp.ne.s32.totalorder %s570_s11, %s927_s12  ;;  %p933_p4 = scmp.lt.s32.totalorder %s927_s12, %s927_s12 }
  0x33   :  { %p934_p5 = por %p933_p4, %p932_p3 }
  0x34   :  { %797 = vmatpush3.bf16.msra.mxu0 %v862_v3  ;;  %849 = vmatpush3.bf16.msra.mxu1 %v862_v3 }
  0x35   :  { %798 = vmatprep.subr.bf16.mxu0 %v863_v6  ;;  %842 = vmatprep.subr.bf16.mxu1 %v863_v6  ;;  %p935_p6 = pnand %p934_p5, %p928_p2 }
  0x38   :  { %799 = vmatpush3.bf16.msra.mxu0 %v863_v6  ;;  %850 = vmatpush3.bf16.msra.mxu1 %v863_v6 }
  0x39   :  { %800 = vmatprep.subr.bf16.mxu0 %v864_v7  ;;  %843 = vmatprep.subr.bf16.mxu1 %v864_v7 }
  0x3c   :  { %801 = vmatpush3.bf16.msra.mxu0 %v864_v7  ;;  %851 = vmatpush3.bf16.msra.mxu1 %v864_v7 }
  0x3d   :  { %802 = vmatprep.subr.bf16.mxu0 %v865_v8  ;;  %844 = vmatprep.subr.bf16.mxu1 %v865_v8 }
  0x40   :  { %803 = vmatpush3.bf16.msra.mxu0 %v865_v8  ;;  %852 = vmatpush3.bf16.msra.mxu1 %v865_v8 }
  0x41   :  { %804 = vmatprep.subr.bf16.mxu0 %v866_v9  ;;  %845 = vmatprep.subr.bf16.mxu1 %v866_v9 }
  0x44   :  { %805 = vmatpush3.bf16.msra.mxu0 %v866_v9  ;;  %853 = vmatpush3.bf16.msra.mxu1 %v866_v9 }
  0x47   :  { %807 = vmatmul.mubr.bf16.vlgmr.msra.gmra.mrb[0].mxu0 %v869_v10  ;;  %823 = vmatmul.mubr.bf16.vlgmr.msra.gmra.mrb[0].mxu1 %v870_v11 }
  0x48   :  { %810 = vmatprep.mubr.bf16.mxu0 %v871_v12  ;;  %826 = vmatprep.mubr.bf16.mxu1 %v872_v13 }
  0x4f   :  { %811 = vmatmul.mubr.bf16.gmra.mrb[4].mxu0 %v873_v14  ;;  %827 = vmatmul.mubr.bf16.gmra.mrb[4].mxu1 %v874_v15 }
  0x50   :  { %814 = vmatprep.mubr.bf16.mxu0 %v875_v16  ;;  %830 = vmatprep.mubr.bf16.mxu1 %v876_v17 }
  0x57   :  { %815 = vmatmul.mubr.bf16.gmra.mrb[8].mxu0 %v877_v18  ;;  %831 = vmatmul.mubr.bf16.gmra.mrb[8].mxu1 %v878_v19 }
  0x58   :  { %818 = vmatprep.mubr.bf16.mxu0 %v879_v20  ;;  %834 = vmatprep.mubr.bf16.mxu1 %v880_v21 }
  0x5f   :  { %819 = vmatmul.mubr.bf16.gmra.mrb[12].mxu0 %v881_v22  ;;  %835 = vmatmul.mubr.bf16.gmra.mrb[12].mxu1 %v882_v23 }
 0x11a   :  { %v808_v24 = vpop.f32.mrb[0].mxu0  ;;  %v824_v26 = vpop.f32.mrb[0].mxu1 }
 0x11b   :  { %v277_v27 = vpop.f32.mrb[1].mxu0  ;;  %v341_v28 = vpop.f32.mrb[1].mxu1  ;;  %v286_v31 = vadd.f32 %v808_v24, %v1013_v25  ;;  %v350_v32 = vadd.f32 %v824_v26, %v1013_v25 }
 0x11c   :  { %v809_v29 = vpop.f32.mrb[2].mxu0  ;;  %v825_v30 = vpop.f32.mrb[2].mxu1  ;;  %v278_v37 = vadd.f32 %v1013_v25, %v277_v27  ;;  %v342_v38 = vadd.f32 %v1013_v25, %v341_v28 }
 0x11d   :  { %v289_v33 = vadd.f32 %v809_v29, %v1013_v25  ;;  %v353_v34 = vadd.f32 %v825_v30, %v1013_v25  ;;  %v280_v35 = vpop.f32.mrb[3].mxu0  ;;  %v344_v36 = vpop.f32.mrb[3].mxu1 }
 0x11e   :  { %v281_v39 = vadd.f32 %v1013_v25, %v280_v35  ;;  %v345_v40 = vadd.f32 %v1013_v25, %v344_v36 }
 0x11f   :  { %v679_v41 = vpack.c.bf16 %v289_v33, %v286_v31  ;;  %v719_v42 = vpack.c.bf16 %v353_v34, %v350_v32 }
 0x120   :  { %v674_v43 = vpack.c.bf16 %v281_v39, %v278_v37  ;;  %v714_v44 = vpack.c.bf16 %v345_v40, %v342_v38 }
 0x121   :  { %751 = vst [vmem:[#allocation7 + $0x8] sm:$0xff] %v679_v41   ;;  %759 = vst [vmem:[#allocation7 + $0x48] sm:$0xff] %v719_v42  }
 0x122   :  { %675 = vst [vmem:[#allocation7] sm:$0xff] %v674_v43   ;;  %758 = vst [vmem:[#allocation7 + $0x40] sm:$0xff] %v714_v44   ;;  %v812_v45 = vpop.f32.mrb[4].mxu0  ;;  %v828_v46 = vpop.f32.mrb[4].mxu1 }
 0x123   :  { %v293_v47 = vpop.f32.mrb[5].mxu0  ;;  %v357_v48 = vpop.f32.mrb[5].mxu1  ;;  %v302_v51 = vadd.f32 %v812_v45, %v1013_v25  ;;  %v366_v52 = vadd.f32 %v828_v46, %v1013_v25 }
 0x124   :  { %v813_v49 = vpop.f32.mrb[6].mxu0  ;;  %v829_v50 = vpop.f32.mrb[6].mxu1  ;;  %v294_v57 = vadd.f32 %v1013_v25, %v293_v47  ;;  %v358_v58 = vadd.f32 %v1013_v25, %v357_v48 }
 0x125   :  { %v305_v53 = vadd.f32 %v813_v49, %v1013_v25  ;;  %v369_v54 = vadd.f32 %v829_v50, %v1013_v25  ;;  %v296_v55 = vpop.f32.mrb[7].mxu0  ;;  %v360_v56 = vpop.f32.mrb[7].mxu1 }
 0x126   :  { %v297_v59 = vadd.f32 %v1013_v25, %v296_v55  ;;  %v361_v60 = vadd.f32 %v1013_v25, %v360_v56 }
 0x127   :  { %v689_v61 = vpack.c.bf16 %v305_v53, %v302_v51  ;;  %v729_v62 = vpack.c.bf16 %v369_v54, %v366_v52 }
 0x128   :  { %v684_v63 = vpack.c.bf16 %v297_v59, %v294_v57  ;;  %v724_v0 = vpack.c.bf16 %v361_v60, %v358_v58 }
 0x129   :  { %753 = vst [vmem:[#allocation7 + $0x18] sm:$0xff] %v689_v61   ;;  %761 = vst [vmem:[#allocation7 + $0x58] sm:$0xff] %v729_v62  }
 0x12a   :  { %752 = vst [vmem:[#allocation7 + $0x10] sm:$0xff] %v684_v63   ;;  %760 = vst [vmem:[#allocation7 + $0x50] sm:$0xff] %v724_v0   ;;  %v816_v1 = vpop.f32.mrb[8].mxu0  ;;  %v832_v2 = vpop.f32.mrb[8].mxu1 }
 0x12b   :  { %v309_v3 = vpop.f32.mrb[9].mxu0  ;;  %v373_v4 = vpop.f32.mrb[9].mxu1  ;;  %v318_v7 = vadd.f32 %v816_v1, %v1013_v25  ;;  %v382_v8 = vadd.f32 %v832_v2, %v1013_v25 }
 0x12c   :  { %v817_v5 = vpop.f32.mrb[10].mxu0  ;;  %v833_v6 = vpop.f32.mrb[10].mxu1  ;;  %v310_v13 = vadd.f32 %v1013_v25, %v309_v3  ;;  %v374_v14 = vadd.f32 %v1013_v25, %v373_v4 }
 0x12d   :  { %v321_v9 = vadd.f32 %v817_v5, %v1013_v25  ;;  %v385_v10 = vadd.f32 %v833_v6, %v1013_v25  ;;  %v312_v11 = vpop.f32.mrb[11].mxu0  ;;  %v376_v12 = vpop.f32.mrb[11].mxu1 }
 0x12e   :  { %v313_v15 = vadd.f32 %v1013_v25, %v312_v11  ;;  %v377_v16 = vadd.f32 %v1013_v25, %v376_v12 }
 0x12f   :  { %v699_v17 = vpack.c.bf16 %v321_v9, %v318_v7  ;;  %v739_v18 = vpack.c.bf16 %v385_v10, %v382_v8 }
 0x130   :  { %v694_v19 = vpack.c.bf16 %v313_v15, %v310_v13  ;;  %v734_v20 = vpack.c.bf16 %v377_v16, %v374_v14 }
 0x131   :  { %755 = vst [vmem:[#allocation7 + $0x28] sm:$0xff] %v699_v17   ;;  %763 = vst [vmem:[#allocation7 + $0x68] sm:$0xff] %v739_v18  }
 0x132   :  { %754 = vst [vmem:[#allocation7 + $0x20] sm:$0xff] %v694_v19   ;;  %762 = vst [vmem:[#allocation7 + $0x60] sm:$0xff] %v734_v20   ;;  %v820_v21 = vpop.f32.mrb[12].mxu0  ;;  %v836_v22 = vpop.f32.mrb[12].mxu1 }
 0x133   :  { %v325_v23 = vpop.f32.mrb[13].mxu0  ;;  %v389_v24 = vpop.f32.mrb[13].mxu1  ;;  %v334_v28 = vadd.f32 %v820_v21, %v1013_v25  ;;  %v398_v29 = vadd.f32 %v836_v22, %v1013_v25 }
 0x134   :  { %v821_v26 = vpop.f32.mrb[14].mxu0  ;;  %v837_v27 = vpop.f32.mrb[14].mxu1  ;;  %v326_v34 = vadd.f32 %v1013_v25, %v325_v23  ;;  %v390_v35 = vadd.f32 %v1013_v25, %v389_v24 }
 0x135   :  { %v337_v30 = vadd.f32 %v821_v26, %v1013_v25  ;;  %v401_v31 = vadd.f32 %v837_v27, %v1013_v25  ;;  %v328_v32 = vpop.f32.mrb[15].mxu0  ;;  %v392_v33 = vpop.f32.mrb[15].mxu1 }
 0x136   :  { %v329_v36 = vadd.f32 %v1013_v25, %v328_v32  ;;  %v393_v37 = vadd.f32 %v1013_v25, %v392_v33 }
 0x137   :  { %v709_v38 = vpack.c.bf16 %v337_v30, %v334_v28  ;;  %v749_v39 = vpack.c.bf16 %v401_v31, %v398_v29 }
 0x138   :  { %v704_v40 = vpack.c.bf16 %v329_v36, %v326_v34  ;;  %v744_v41 = vpack.c.bf16 %v393_v37, %v390_v35 }
 0x139   :  { %757 = vst [vmem:[#allocation7 + $0x38] sm:$0xff] %v709_v38   ;;  %765 = vst [vmem:[#allocation7 + $0x78] sm:$0xff] %v749_v39  }
 0x13a   :  { %756 = vst [vmem:[#allocation7 + $0x30] sm:$0xff] %v704_v40   ;;  %764 = vst [vmem:[#allocation7 + $0x70] sm:$0xff] %v744_v41  }
 0x13b   :  { %938 = shalt.err (!%p935_p6)
}
 0x13c   :  { %s939_s15 = scalar_lea.hbm %s1065_s3, 2048 }
 0x13d   :  { %p940_p7 = scmp.ne.s32.totalorder %s1065_s3, %s939_s15  ;;  %p943_p8 = scmp.lt.u32.totalorder %s939_s15, %s1065_s3 }
 0x13f   :  { %p945_p9 = pnand %p943_p8, %p940_p7 }
 0x141   :  { %948 = shalt.err (!%p945_p9)
}
 0x142   :  { %575 = dma.vmem_to_hbm [thread:$0]  %s570_s11, 2048, %s1065_s3, [#allocation4], %s956_s22, %s956_s22, %s957_s23  }
 0x143   :  { %953 = dma.done.wait [#allocation4], 2048  }
 0x144   :  { %954 = vsyncadd [#allocation4], 4294965248 }
 0x145   :  { %579 = vsyncpa [#allocation3], 1 }
 0x146   :  { %580 = vsyncpa [#allocation6], 1 }
 0x147   :  { %581 = vsyncpa [#allocation4], 1 }

</bundles_post_ra>
